<compile_context>
chip_gen: v7x
topology: tpu7x:2x2x1
jax: 0.10.0
libtpu: 0.0.40
codegen_flags: <defaults>
</compile_context>

<pallas_src>
import jax
import jax.numpy as jnp
from jax import lax
from jax.experimental import pallas as pl
from jax.experimental.pallas import tpu as pltpu


def _round_up(x, m):
    return ((x + m - 1) // m) * m


def _linear_kernel(x_ref, w_ref, b_ref, o_ref, acc_ref):
    """One (tm, tn) output tile; reduction over the K grid axis (axis 2).

    x_ref:   (tm, tk)   activation tile
    w_ref:   (tn, tk)   PyTorch-layout weight tile (D_out, D_in slice)
    b_ref:   (1,  tn)   bias row
    o_ref:   (tm, tn)   output tile
    acc_ref: (tm, tn)   f32 VMEM accumulator, resident across the K axis
    """
    k = pl.program_id(2)

    @pl.when(k == 0)
    def _():
        acc_ref[...] = jnp.zeros_like(acc_ref)

    # MXU matmul contracting on W's last axis (== x @ W^T), f32 accumulation.
    acc_ref[...] += lax.dot_general(
        x_ref[...], w_ref[...],
        dimension_numbers=(((1,), (1,)), ((), ())),
        preferred_element_type=jnp.float32)

    @pl.when(k == pl.num_programs(2) - 1)
    def _():
        o_ref[...] = (acc_ref[...] + b_ref[...]).astype(o_ref.dtype)


def linear_forward(x, weight, bias):
    """y = x @ weight.T + bias   (PyTorch nn.Linear semantics).

    x:      (N, D_in)       float32
    weight: (D_out, D_in)   float32  (PyTorch layout — NOT transposed here)
    bias:   (D_out,)        float32
    returns (N, D_out)      float32
    """
    n, d_in = x.shape
    d_out, d_in_w = weight.shape
    assert d_in_w == d_in, "weight/in-feature mismatch"

    # Tile sizes: largest hardware-friendly tiles that make sense for the
    # (padded) problem. Sublane dim (tm) multiple of 8, lane dims (tn, tk)
    # multiples of 128. Budget 2*(tm*tk + tn*tk + tm*tn)*4B + acc ~ 4.5 MiB.
    TM_MAX, TN_MAX, TK_MAX = 512, 256, 512
    tm = min(TM_MAX, _round_up(n, 8))
    tn = min(TN_MAX, _round_up(d_out, 128))
    tk = min(TK_MAX, _round_up(d_in, 128))

    n_p = _round_up(n, tm)
    d_out_p = _round_up(d_out, tn)
    d_in_p = _round_up(d_in, tk)

    # Zero-pad to tile multiples (padded K columns are zero in both operands,
    # so they add nothing; padded rows/cols are sliced off at the end).
    x_p = jnp.pad(x, ((0, n_p - n), (0, d_in_p - d_in)))
    w_p = jnp.pad(weight, ((0, d_out_p - d_out), (0, d_in_p - d_in)))
    b_p = jnp.pad(bias, (0, d_out_p - d_out)).reshape(1, d_out_p)

    grid = (n_p // tm, d_out_p // tn, d_in_p // tk)

    cost = pl.CostEstimate(
        flops=2 * n * d_in * d_out,
        transcendentals=0,
        bytes_accessed=4 * (n * d_in + d_out * d_in + d_out + n * d_out))

    y_p = pl.pallas_call(
        _linear_kernel,
        out_shape=jax.ShapeDtypeStruct((n_p, d_out_p), x.dtype),
        grid_spec=pltpu.PrefetchScalarGridSpec(
            num_scalar_prefetch=0,
            grid=grid,
            in_specs=[
                pl.BlockSpec((tm, tk), lambda i, j, k: (i, k)),   # x
                pl.BlockSpec((tn, tk), lambda i, j, k: (j, k)),   # weight (D_out, D_in)
                pl.BlockSpec((1, tn), lambda i, j, k: (0, j)),    # bias
            ],
            out_specs=pl.BlockSpec((tm, tn), lambda i, j, k: (i, j)),
            scratch_shapes=[pltpu.VMEM((tm, tn), jnp.float32)],
        ),
        compiler_params=pltpu.CompilerParams(
            dimension_semantics=("parallel", "parallel", "arbitrary")),
        cost_estimate=cost,
    )(x_p, w_p, b_p)

    return y_p[:n, :d_out]


linear_forward_jit = jax.jit(linear_forward)


def init_linear_params(key, input_dim, output_dim):
    # Deterministic init mimicking nn.Linear default: U(-1/sqrt(in), 1/sqrt(in)).
    kw, kb = jax.random.split(key)
    bound = 1.0 / jnp.sqrt(jnp.float32(input_dim))
    weight = jax.random.uniform(
        kw, (output_dim, input_dim), jnp.float32, minval=-bound, maxval=bound)
    bias = jax.random.uniform(
        kb, (output_dim,), jnp.float32, minval=-bound, maxval=bound)
    return weight, bias


if __name__ == "__main__":
    key = jax.random.PRNGKey(0)
    k_x, k_p, k_x2, k_p2 = jax.random.split(key, 4)

    # --- Small demo shapes matching the PyTorch regression example ---------
    batch, input_dim, output_dim = 8, 4, 1
    x = jax.random.normal(k_x, (batch, input_dim), jnp.float32)
    weight, bias = init_linear_params(k_p, input_dim, output_dim)

    y = jax.block_until_ready(linear_forward_jit(x, weight, bias))
    y_ref = x @ weight.T + bias
    assert y.shape == (batch, output_dim)
    assert jnp.allclose(y, y_ref, atol=1e-5, rtol=1e-5)

    # --- Larger shape exercising the tiled (M, N, K) grid + K reduction ----
    n2, d_in2, d_out2 = 640, 640, 384
    x2 = jax.random.normal(k_x2, (n2, d_in2), jnp.float32)
    w2, b2 = init_linear_params(k_p2, d_in2, d_out2)

    y2 = jax.block_until_ready(linear_forward_jit(x2, w2, b2))
    y2_ref = jnp.matmul(x2, w2.T, precision=lax.Precision.HIGHEST) + b2
    assert y2.shape == (n2, d_out2)
    assert jnp.allclose(y2, y2_ref, atol=1e-2, rtol=1e-2)

    print("KERNEL_OK")
</pallas_src>

<mosaic_0001>
module attributes {stable_mosaic.version = 11 : i64} {
  func.func @_linear_kernel(%arg0: i32, %arg1: i32, %arg2: i32, %arg3: memref<8x128xf32, #tpu.memory_space<vmem>>, %arg4: memref<128x128xf32, #tpu.memory_space<vmem>>, %arg5: memref<1x128xf32, #tpu.memory_space<vmem>>, %arg6: memref<8x128xf32, #tpu.memory_space<vmem>>, %arg7: memref<8x128xf32, #tpu.memory_space<vmem>>) attributes {dimension_semantics = [#tpu.dimension_semantics<parallel>, #tpu.dimension_semantics<parallel>, #tpu.dimension_semantics<arbitrary>], iteration_bounds = array<i64: 1, 1, 1>, scalar_prefetch = 0 : i64, scratch_operands = 1 : i64, tpu.core_type = #tpu.core_type<tc>, window_params = [{transform_indices = @transform_0, window_bounds = array<i64: 8, 128>}, {transform_indices = @transform_1, window_bounds = array<i64: 128, 128>}, {transform_indices = @transform_2, window_bounds = array<i64: 1, 128>}, {transform_indices = @transform_3, window_bounds = array<i64: 8, 128>}]} {
    %c0_i32 = arith.constant 0 : i32
    %0 = arith.cmpi eq, %arg2, %c0_i32 : i32
    %1 = arith.extui %0 : i1 to i32
    %c0_i32_0 = arith.constant 0 : i32
    %2 = arith.cmpi ne, %1, %c0_i32_0 : i32
    scf.if %2 {
      %cst_10 = arith.constant 0.000000e+00 : f32
      %12 = vector.broadcast %cst_10 : f32 to vector<8x128xf32>
      %c0_11 = arith.constant 0 : index
      %c0_12 = arith.constant 0 : index
      %13 = vector.load %arg7[%c0_11, %c0_12] : memref<8x128xf32, #tpu.memory_space<vmem>>, vector<8x128xf32>
      tpu.vector_store %arg7[%c0_11, %c0_12], %12 {strides = array<i32>} : memref<8x128xf32, #tpu.memory_space<vmem>>, vector<8x128xf32>,
    } else {
    }
    %c0 = arith.constant 0 : index
    %c0_1 = arith.constant 0 : index
    %3 = vector.load %arg7[%c0, %c0_1] : memref<8x128xf32, #tpu.memory_space<vmem>>, vector<8x128xf32>
    %c0_2 = arith.constant 0 : index
    %c0_3 = arith.constant 0 : index
    %4 = vector.load %arg3[%c0_2, %c0_3] : memref<8x128xf32, #tpu.memory_space<vmem>>, vector<8x128xf32>
    %c0_4 = arith.constant 0 : index
    %c0_5 = arith.constant 0 : index
    %5 = vector.load %arg4[%c0_4, %c0_5] : memref<128x128xf32, #tpu.memory_space<vmem>>, vector<128x128xf32>
    %cst = arith.constant dense<0.000000e+00> : vector<8x128xf32>
    %6 = tpu.matmul %4, %5, %cst {dimension_numbers = #tpu.dot_dimension_numbers<[1], [1], [0], [0], [0, 0, 1, 0], [], []>} : vector<8x128xf32>, vector<128x128xf32>, vector<8x128xf32> -> vector<8x128xf32>
    %7 = arith.addf %3, %6 : vector<8x128xf32>
    %c0_6 = arith.constant 0 : index
    %c0_7 = arith.constant 0 : index
    %8 = vector.load %arg7[%c0_6, %c0_7] : memref<8x128xf32, #tpu.memory_space<vmem>>, vector<8x128xf32>
    tpu.vector_store %arg7[%c0_6, %c0_7], %7 {strides = array<i32>} : memref<8x128xf32, #tpu.memory_space<vmem>>, vector<8x128xf32>,
    %c0_i32_8 = arith.constant 0 : i32
    %9 = arith.cmpi eq, %arg2, %c0_i32_8 : i32
    %10 = arith.extui %9 : i1 to i32
    %c0_i32_9 = arith.constant 0 : i32
    %11 = arith.cmpi ne, %10, %c0_i32_9 : i32
    scf.if %11 {
      %c0_10 = arith.constant 0 : index
      %c0_11 = arith.constant 0 : index
      %12 = vector.load %arg7[%c0_10, %c0_11] : memref<8x128xf32, #tpu.memory_space<vmem>>, vector<8x128xf32>
      %c0_12 = arith.constant 0 : index
      %c0_13 = arith.constant 0 : index
      %13 = vector.load %arg5[%c0_12, %c0_13] : memref<1x128xf32, #tpu.memory_space<vmem>>, vector<1x128xf32>
      %14 = vector.broadcast %13 : vector<1x128xf32> to vector<8x128xf32>
      %15 = arith.addf %12, %14 : vector<8x128xf32>
      %c0_14 = arith.constant 0 : index
      %c0_15 = arith.constant 0 : index
      %16 = vector.load %arg6[%c0_14, %c0_15] : memref<8x128xf32, #tpu.memory_space<vmem>>, vector<8x128xf32>
      tpu.vector_store %arg6[%c0_14, %c0_15], %15 {strides = array<i32>} : memref<8x128xf32, #tpu.memory_space<vmem>>, vector<8x128xf32>,
    } else {
    }
    return
  }
  func.func @transform_0(%arg0: i32, %arg1: i32, %arg2: i32) -> (i32, i32) {
    %c0_i32 = arith.constant 0 : i32
    return %arg0, %arg2 : i32, i32
  }
  func.func @transform_1(%arg0: i32, %arg1: i32, %arg2: i32) -> (i32, i32) {
    %c0_i32 = arith.constant 0 : i32
    return %arg1, %arg2 : i32, i32
  }
  func.func @transform_2(%arg0: i32, %arg1: i32, %arg2: i32) -> (i32, i32) {
    %c0_i32 = arith.constant 0 : i32
    %c0_i32_0 = arith.constant 0 : i32
    return %c0_i32, %arg1 : i32, i32
  }
  func.func @transform_3(%arg0: i32, %arg1: i32, %arg2: i32) -> (i32, i32) {
    %c0_i32 = arith.constant 0 : i32
    return %arg0, %arg1 : i32, i32
  }
}

</mosaic_0001>

<bundles_post_ra>
// kernel: linear_forward.1
= control target key start
LH: loop header
LB: loop body
LE: loop exit
PB: predicated region body
PF: predicated region fallthrough
CT: control target
= control target key end

     0   :  { %v206_v0 = vmov 0.0|0.0   ;;  %vm207_vm0 = vmmov 0   ;;  %v208_v3 = vmov 0.0   ;;  %s286_s1 = inlined_call_operand.vmem [shape: f32[128,128], index: 1, kind: input, shape index: {}]   ;;  %s287_s0 = inlined_call_operand.vmem [shape: f32[8,128], index: 0, kind: input, shape index: {}]   ;;  %s288_s2 = inlined_call_operand.vmem [shape: f32[1,128], index: 2, kind: input, shape index: {}]   ;;  %s289_s3 = inlined_call_operand.vmem [shape: f32[8,128], index: 3, kind: output, shape index: {}]  }
   0x1   :  { %179 = vmatprep.subr.bf16.mxu0 %v206_v0  ;;  %v21_v1 = vld [vmem:[%s286_s1] sm:$0xff]  ;;  %v22_v2 = vld [vmem:[%s286_s1 + $0x8] sm:$0xff]  ;;  %176 = vmatprep.mubr.msk.f32.mxu0 %vm207_vm0, %v208_v3  ;;  %v23_v5 = vld [vmem:[%s286_s1 + $0x10] sm:$0xff] }
   0x2   :  { %v180_v4 = vpack.c.bf16 %v22_v2, %v21_v1  ;;  %v24_v6 = vld [vmem:[%s286_s1 + $0x18] sm:$0xff]  ;;  %v25_v8 = vld [vmem:[%s286_s1 + $0x20] sm:$0xff]  ;;  %v26_v9 = vld [vmem:[%s286_s1 + $0x28] sm:$0xff] }
   0x3   :  { %v183_v7 = vpack.c.bf16 %v24_v6, %v23_v5  ;;  %v186_v10 = vpack.c.bf16 %v26_v9, %v25_v8  ;;  %v27_v11 = vld [vmem:[%s286_s1 + $0x30] sm:$0xff]  ;;  %v28_v12 = vld [vmem:[%s286_s1 + $0x38] sm:$0xff]  ;;  %v29_v14 = vld [vmem:[%s286_s1 + $0x40] sm:$0xff] }
   0x4   :  { %181 = vmatpush3.bf16.xpose.msra.mxu0 %v180_v4  ;;  %v189_v13 = vpack.c.bf16 %v28_v12, %v27_v11  ;;  %v30_v15 = vld [vmem:[%s286_s1 + $0x48] sm:$0xff]  ;;  %v31_v17 = vld [vmem:[%s286_s1 + $0x50] sm:$0xff]  ;;  %v32_v18 = vld [vmem:[%s286_s1 + $0x58] sm:$0xff] }
   0x5   :  { %182 = vmatprep.subr.bf16.mxu0 %v206_v0  ;;  %v192_v16 = vpack.c.bf16 %v30_v15, %v29_v14  ;;  %v195_v19 = vpack.c.bf16 %v32_v18, %v31_v17  ;;  %v33_v20 = vld [vmem:[%s286_s1 + $0x60] sm:$0xff]  ;;  %v34_v21 = vld [vmem:[%s286_s1 + $0x68] sm:$0xff]  ;;  %v35_v23 = vld [vmem:[%s286_s1 + $0x70] sm:$0xff] }
   0x6   :  { %v198_v22 = vpack.c.bf16 %v34_v21, %v33_v20  ;;  %v36_v24 = vld [vmem:[%s286_s1 + $0x78] sm:$0xff]  ;;  %v20_v26 = vld [vmem:[%s287_s0] sm:$0xff] }
   0x7   :  { %v201_v25 = vpack.c.bf16 %v36_v24, %v35_v23  ;;  %v126_v27 = vld [vmem:[%s288_s2] ss:$0 sm:$0xff] }
   0xc   :  { %184 = vmatpush3.bf16.xpose.msra.mxu0 %v183_v7 }
   0xd   :  { %185 = vmatprep.subr.bf16.mxu0 %v206_v0 }
  0x14   :  { %187 = vmatpush3.bf16.xpose.msra.mxu0 %v186_v10 }
  0x15   :  { %188 = vmatprep.subr.bf16.mxu0 %v206_v0 }
  0x1c   :  { %190 = vmatpush3.bf16.xpose.msra.mxu0 %v189_v13 }
  0x1d   :  { %191 = vmatprep.subr.bf16.mxu0 %v206_v0 }
  0x24   :  { %193 = vmatpush3.bf16.xpose.msra.mxu0 %v192_v16 }
  0x25   :  { %194 = vmatprep.subr.bf16.mxu0 %v206_v0 }
  0x2c   :  { %196 = vmatpush3.bf16.xpose.msra.mxu0 %v195_v19 }
  0x2d   :  { %197 = vmatprep.subr.bf16.mxu0 %v206_v0 }
  0x34   :  { %199 = vmatpush3.bf16.xpose.msra.mxu0 %v198_v22 }
  0x35   :  { %200 = vmatprep.subr.bf16.mxu0 %v206_v0 }
  0x3c   :  { %202 = vmatpush3.bf16.xpose.msra.mxu0 %v201_v25 }
  0x43   :  { %177 = vmatmul.mubr.f32.vlgmr.msra.gmra.mrb[0].mxu0 %v20_v26 }
 0x116   :  { %v103_v28 = vpop.f32.mrb[0].mxu0 }
 0x117   :  { %v120_v29 = vadd.f32 %v126_v27, %v103_v28  ;;  %v178_v30 = vpop.f32.mrb[1].mxu0 }
 0x119   :  { %121 = vst [vmem:[%s289_s3] sm:$0xff] %v120_v29 }

</bundles_post_ra>
